<compile_context>
chip_gen: v6e
topology: v6e:2x2x1
jax: 0.10.0
libtpu: 0.0.40
codegen_flags: <defaults>
</compile_context>

<pallas_src>
import functools
import math
from typing import NamedTuple

import jax
import jax.numpy as jnp
from jax.experimental import pallas as pl
from jax.experimental.pallas import tpu as pltpu


def _round_up(x: int, n: int) -> int:
    return ((x + n - 1) // n) * n


def _vmem_capacity_bytes() -> int:
    try:
        return int(pltpu.get_tpu_info().vmem_capacity_bytes)
    except Exception:
        # Conservative fallback (v7x per-core VMEM); also safe on v5e/v6e.
        return 64 * 1024 * 1024


class MlpHeadConfig(NamedTuple):
    tanh: bool
    resident: bool
    tm_cap: int
    row_mult: int
    th: int
    tn: int
    d_pad: int
    h_pad: int
    o_pad: int
    out_dim: int
    vmem_limit: int
    compute_dtype: str  # dtype name -> hashable for jit static arg


def _pick_tm(m: int, cap: int, mult: int) -> int:
    """Token tile <= cap that keeps padding waste small (<~12.5%)."""
    cap = max(mult, (cap // mult) * mult)
    if m <= cap:
        return _round_up(m, mult)
    best_t = cap
    best_w = _round_up(m, cap) - m
    t = cap
    while best_w * 8 > m and t > mult:
        t = max(mult, _round_up(t // 2, mult))
        w = _round_up(m, t) - m
        if w < best_w:
            best_t, best_w = t, w
    return best_t


def _pick_feature_tile(dim_pad: int, cap: int) -> int:
    """Largest multiple of 128 <= cap minimizing round_up(dim_pad, tile)."""
    cap = min(cap, dim_pad)
    cap = max(128, (cap // 128) * 128)
    best, best_total = cap, _round_up(dim_pad, cap)
    t = cap
    while best_total > dim_pad and t > 128:
        t -= 128
        total = _round_up(dim_pad, t)
        if total < best_total:
            best, best_total = t, total
    return best


def _resident_bytes(tm, d_pad, h_pad, o_pad, cb):
    # x/out tiles double-buffered; weights counted x2 as a buffering safety
    # margin; plus f32 hidden intermediate and f32 pre-store result.
    return (2 * (tm * d_pad + tm * o_pad) * cb
            + 2 * (d_pad * h_pad + h_pad * o_pad + h_pad + o_pad) * cb
            + tm * h_pad * 4 + tm * o_pad * 4)


def _tiled_bytes(tm, d_pad, th, tn, cb):
    return (2 * (tm * d_pad + d_pad * th + th + th * tn + tn + tm * tn) * cb
            + tm * th * 4 + 2 * tm * tn * 4)


def make_mlp_head_config(d_model, mlp_dim, out_dim, *, tanh=False,
                         compute_dtype=None, x_dtype=jnp.float32,
                         force_tiled=False) -> MlpHeadConfig:
    if compute_dtype is None:
        compute_dtype = (jnp.bfloat16 if jnp.dtype(x_dtype) == jnp.bfloat16
                         else jnp.float32)
    cdt = jnp.dtype(compute_dtype)
    cb = cdt.itemsize
    row_mult = max(8, 32 // cb)          # 8 for f32, 16 for bf16

    phys = _vmem_capacity_bytes()
    vmem_limit = min(int(phys * 0.85), phys - (4 << 20))
    budget = int(phys * 0.6)             # headroom for Mosaic internal scratch

    d_pad = _round_up(d_model, 128)
    h_pad0 = _round_up(mlp_dim, 128)
    o_pad0 = _round_up(out_dim, 128)

    # Bigger token tile where VMEM allows (v5e/v6e: 128 MiB; v7x: 64 MiB).
    tm_cap = 512 if budget >= (64 << 20) else 256

    resident = (not force_tiled) and (
        _resident_bytes(tm_cap, d_pad, h_pad0, o_pad0, cb) <= budget)

    if resident:
        th, tn = h_pad0, o_pad0
        h_pad, o_pad = h_pad0, o_pad0
    else:
        if force_tiled:
            th = min(128, h_pad0)
            tn = min(128, o_pad0)
        else:
            th = _pick_feature_tile(h_pad0, 1024 if tm_cap == 512 else 512)
            tn = _pick_feature_tile(o_pad0, 512)
        # Shrink tiles until the per-step working set fits the budget.
        while (_tiled_bytes(tm_cap, d_pad, th, tn, cb) > budget
               and (th > 128 or tn > 128 or tm_cap > row_mult)):
            if th >= tn and th > 128:
                th = _pick_feature_tile(h_pad0, th - 128)
            elif tn > 128:
                tn = _pick_feature_tile(o_pad0, tn - 128)
            else:
                tm_cap = max(row_mult, _round_up(tm_cap // 2, row_mult))
        h_pad = _round_up(h_pad0, th)
        o_pad = _round_up(o_pad0, tn)

    return MlpHeadConfig(
        tanh=bool(tanh), resident=bool(resident), tm_cap=int(tm_cap),
        row_mult=int(row_mult), th=int(th), tn=int(tn), d_pad=int(d_pad),
        h_pad=int(h_pad), o_pad=int(o_pad), out_dim=int(out_dim),
        vmem_limit=int(vmem_limit), compute_dtype=cdt.name)


def _pad2(a, rows, cols):
    pr = rows - a.shape[0]
    pc = cols - a.shape[1]
    if pr or pc:
        a = jnp.pad(a, ((0, pr), (0, pc)))
    return a


def prepare_mlp_head_params(w1, b1, w2, b2, cfg: MlpHeadConfig):
    """Pad/cast weights ONCE (hoisted out of the per-call hot path)."""
    cdt = jnp.dtype(cfg.compute_dtype)
    d_model, mlp_dim = w1.shape
    out_dim = w2.shape[1]
    w1p = _pad2(w1.astype(cdt), cfg.d_pad, cfg.h_pad)
    b1p = _pad2(b1.astype(jnp.float32).reshape(1, mlp_dim), 1, cfg.h_pad)
    w2p = _pad2(w2.astype(cdt), cfg.h_pad, cfg.o_pad)
    b2p = _pad2(b2.astype(jnp.float32).reshape(1, out_dim), 1, cfg.o_pad)
    return w1p, b1p, w2p, b2p


# ---------------------------------------------------------------------------
# Kernels
# ---------------------------------------------------------------------------

def _mlp_head_fused_kernel(x_ref, w1_ref, b1_ref, w2_ref, b2_ref, o_ref, *,
                           apply_tanh):
    # Weight blocks have constant indices -> fetched from HBM once, then
    # resident in VMEM for the whole token sweep.
    h = jnp.dot(x_ref[...], w1_ref[...], preferred_element_type=jnp.float32)
    h = jnp.maximum(h + b1_ref[...], 0.0)
    y = jnp.dot(h.astype(w2_ref.dtype), w2_ref[...],
                preferred_element_type=jnp.float32)
    y = y + b2_ref[...]
    if apply_tanh:
        y = jnp.tanh(y)
    o_ref[...] = y.astype(o_ref.dtype)


def _mlp_head_tiled_kernel(x_ref, w1_ref, b1_ref, w2_ref, b2_ref, o_ref,
                           acc_ref, *, apply_tanh):
    k = pl.program_id(2)

    # First linear on this hidden chunk: (tm, d) @ (d, th) + b1, ReLU.
    h = jnp.dot(x_ref[...], w1_ref[...], preferred_element_type=jnp.float32)
    h = jnp.maximum(h + b1_ref[...], 0.0)
    # Second linear partial sum for this (hidden chunk, out tile): f32 acc.
    part = jnp.dot(h.astype(w2_ref.dtype), w2_ref[...],
                   preferred_element_type=jnp.float32)

    @pl.when(k == 0)
    def _():
        acc_ref[...] = part          # write first partial: no zero-fill + RMW

    @pl.when(k > 0)
    def _():
        acc_ref[...] += part

    @pl.when(k == pl.num_programs(2) - 1)
    def _():
        y = acc_ref[...] + b2_ref[...]
        if apply_tanh:
            y = jnp.tanh(y)
        o_ref[...] = y.astype(o_ref.dtype)


# ---------------------------------------------------------------------------
# Wrapper
# ---------------------------------------------------------------------------

@functools.partial(jax.jit, static_argnames=("cfg",))
def mlp_head_apply(x, w1p, b1p, w2p, b2p, cfg: MlpHeadConfig):
    *lead, d_model = x.shape
    m = max(1, math.prod(lead))
    cdt = jnp.dtype(cfg.compute_dtype)
    out_dtype = x.dtype

    tm = _pick_tm(m, cfg.tm_cap, cfg.row_mult)
    m_pad = _round_up(m, tm)

    x2d = _pad2(x.reshape(m, d_model).astype(cdt), m_pad, cfg.d_pad)
    num_i = m_pad // tm

    if cfg.resident:
        kernel = functools.partial(_mlp_head_fused_kernel, apply_tanh=cfg.tanh)
        grid = (num_i,)
        in_specs = [
            pl.BlockSpec((tm, cfg.d_pad), lambda i: (i, 0)),        # x tile
            pl.BlockSpec((cfg.d_pad, cfg.h_pad), lambda i: (0, 0)),  # W1 (resident)
            pl.BlockSpec((1, cfg.h_pad), lambda i: (0, 0)),          # b1
            pl.BlockSpec((cfg.h_pad, cfg.o_pad), lambda i: (0, 0)),  # W2 (resident)
            pl.BlockSpec((1, cfg.o_pad), lambda i: (0, 0)),          # b2
        ]
        out_specs = pl.BlockSpec((tm, cfg.o_pad), lambda i: (i, 0))
        scratch = []
        dims = ("parallel",)
    else:
        kernel = functools.partial(_mlp_head_tiled_kernel, apply_tanh=cfg.tanh)
        grid = (num_i, cfg.o_pad // cfg.tn, cfg.h_pad // cfg.th)
        # Note: on v7x, sharding j (not i) across the two TensorCores halves
        # per-core W2 HBM traffic when weight-bandwidth-bound.
        in_specs = [
            pl.BlockSpec((tm, cfg.d_pad), lambda i, j, k: (i, 0)),   # x tile
            pl.BlockSpec((cfg.d_pad, cfg.th), lambda i, j, k: (0, k)),  # W1 chunk
            pl.BlockSpec((1, cfg.th), lambda i, j, k: (0, k)),       # b1 chunk
            pl.BlockSpec((cfg.th, cfg.tn), lambda i, j, k: (k, j)),  # W2 chunk
            pl.BlockSpec((1, cfg.tn), lambda i, j, k: (0, j)),       # b2 tile
        ]
        out_specs = pl.BlockSpec((tm, cfg.tn), lambda i, j, k: (i, j))
        scratch = [pltpu.VMEM((tm, cfg.tn), jnp.float32)]
        dims = ("parallel", "parallel", "arbitrary")

    out2d = pl.pallas_call(
        kernel,
        out_shape=jax.ShapeDtypeStruct((m_pad, cfg.o_pad), out_dtype),
        grid_spec=pltpu.PrefetchScalarGridSpec(
            num_scalar_prefetch=0,
            grid=grid,
            in_specs=in_specs,
            out_specs=out_specs,
            scratch_shapes=scratch,
        ),
        compiler_params=pltpu.CompilerParams(
            dimension_semantics=dims,
            vmem_limit_bytes=cfg.vmem_limit,
        ),
    )(x2d, w1p, b1p, w2p, b2p)

    out = out2d[:m, :cfg.out_dim]
    return out.reshape(*lead, cfg.out_dim)


def mlp_head(x, w1, b1, w2, b2, *, tanh=False, compute_dtype=None,
             force_tiled=False):
    """One-shot convenience wrapper. For repeated inference calls, build the
    config and padded params once (make_mlp_head_config /
    prepare_mlp_head_params) and call mlp_head_apply directly."""
    d_model, mlp_dim = w1.shape
    out_dim = w2.shape[1]
    cfg = make_mlp_head_config(d_model, mlp_dim, out_dim, tanh=tanh,
                               compute_dtype=compute_dtype, x_dtype=x.dtype,
                               force_tiled=force_tiled)
    params = prepare_mlp_head_params(w1, b1, w2, b2, cfg)
    return mlp_head_apply(x, *params, cfg=cfg)


def reference(x, w1, b1, w2, b2, *, tanh=False):
    h = jnp.maximum(jnp.einsum("...d,dh->...h", x, w1) + b1, 0.0)
    y = jnp.einsum("...h,ho->...o", h, w2) + b2
    return jnp.tanh(y) if tanh else y


if __name__ == "__main__":
    # Small shapes consistent with MlpHead; out_dim=150 (25*6-style, not a
    # multiple of 128) exercises the lane-padding path.
    batch, seq, d_model, mlp_dim, out_dim = 2, 8, 128, 256, 150

    key = jax.random.PRNGKey(0)
    kx, kw1, kb1, kw2, kb2 = jax.random.split(key, 5)

    x = jax.random.normal(kx, (batch, seq, d_model), dtype=jnp.float32)
    lim1 = 1.0 / (d_model ** 0.5)
    lim2 = 1.0 / (mlp_dim ** 0.5)
    # Weights stored (in, out) = transpose of torch nn.Linear's (out, in).
    w1 = jax.random.uniform(kw1, (d_model, mlp_dim), jnp.float32, -lim1, lim1)
    b1 = jax.random.uniform(kb1, (mlp_dim,), jnp.float32, -lim1, lim1)
    w2 = jax.random.uniform(kw2, (mlp_dim, out_dim), jnp.float32, -lim2, lim2)
    b2 = jax.random.uniform(kb2, (out_dim,), jnp.float32, -lim2, lim2)

    ref = reference(x, w1, b1, w2, b2, tanh=False)
    ref_t = reference(x, w1, b1, w2, b2, tanh=True)

    # 1) Default path: weights VMEM-resident, fully fused single-axis grid.
    out = jax.block_until_ready(mlp_head(x, w1, b1, w2, b2, tanh=False))
    assert out.shape == (batch, seq, out_dim)
    assert jnp.allclose(out, ref, atol=1e-4, rtol=1e-4)

    # 2) Tiled path ((i, j, k) grid + f32 accumulator) with the tanh head.
    out_t = jax.block_until_ready(
        mlp_head(x, w1, b1, w2, b2, tanh=True, force_tiled=True))
    assert out_t.shape == (batch, seq, out_dim)
    assert jnp.allclose(out_t, ref_t, atol=1e-4, rtol=1e-4)

    # 3) bf16 MXU compute path (f32 accumulation), looser tolerance.
    out_bf = jax.block_until_ready(
        mlp_head(x, w1, b1, w2, b2, tanh=False, compute_dtype=jnp.bfloat16))
    assert out_bf.shape == (batch, seq, out_dim)
    assert jnp.allclose(out_bf, ref, atol=5e-2, rtol=5e-2)

    print("KERNEL_OK")
</pallas_src>

<mosaic_0001>
module attributes {stable_mosaic.version = 11 : i64} {
  func.func @_mlp_head_fused_kernel(%arg0: i32, %arg1: memref<16x128xf32, #tpu.memory_space<vmem>>, %arg2: memref<128x256xf32, #tpu.memory_space<vmem>>, %arg3: memref<1x256xf32, #tpu.memory_space<vmem>>, %arg4: memref<256x256xf32, #tpu.memory_space<vmem>>, %arg5: memref<1x256xf32, #tpu.memory_space<vmem>>, %arg6: memref<16x256xf32, #tpu.memory_space<vmem>>) attributes {dimension_semantics = [#tpu.dimension_semantics<parallel>], iteration_bounds = array<i64: 1>, scalar_prefetch = 0 : i64, scratch_operands = 0 : i64, tpu.core_type = #tpu.core_type<tc>, window_params = [{transform_indices = @transform_0, window_bounds = array<i64: 16, 128>}, {pipeline_mode = #tpu.pipeline_mode<synchronous>, transform_indices = @transform_1, window_bounds = array<i64: 128, 256>}, {pipeline_mode = #tpu.pipeline_mode<synchronous>, transform_indices = @transform_2, window_bounds = array<i64: 1, 256>}, {pipeline_mode = #tpu.pipeline_mode<synchronous>, transform_indices = @transform_3, window_bounds = array<i64: 256, 256>}, {pipeline_mode = #tpu.pipeline_mode<synchronous>, transform_indices = @transform_4, window_bounds = array<i64: 1, 256>}, {transform_indices = @transform_5, window_bounds = array<i64: 16, 256>}]} {
    %c0 = arith.constant 0 : index
    %c0_0 = arith.constant 0 : index
    %0 = vector.load %arg1[%c0, %c0_0] : memref<16x128xf32, #tpu.memory_space<vmem>>, vector<16x128xf32>
    %c0_1 = arith.constant 0 : index
    %c0_2 = arith.constant 0 : index
    %1 = vector.load %arg2[%c0_1, %c0_2] : memref<128x256xf32, #tpu.memory_space<vmem>>, vector<128x256xf32>
    %cst = arith.constant dense<0.000000e+00> : vector<16x256xf32>
    %2 = tpu.matmul %0, %1, %cst {dimension_numbers = #tpu.dot_dimension_numbers<[1], [0], [0], [1], [0, 0, 1, 1], [], []>} : vector<16x128xf32>, vector<128x256xf32>, vector<16x256xf32> -> vector<16x256xf32>
    %c0_3 = arith.constant 0 : index
    %c0_4 = arith.constant 0 : index
    %3 = vector.load %arg3[%c0_3, %c0_4] : memref<1x256xf32, #tpu.memory_space<vmem>>, vector<1x256xf32>
    %4 = vector.broadcast %3 : vector<1x256xf32> to vector<16x256xf32>
    %5 = arith.addf %2, %4 : vector<16x256xf32>
    %cst_5 = arith.constant 0.000000e+00 : f32
    %6 = vector.broadcast %cst_5 : f32 to vector<16x256xf32>
    %7 = arith.maximumf %5, %6 : vector<16x256xf32>
    %c0_6 = arith.constant 0 : index
    %c0_7 = arith.constant 0 : index
    %8 = vector.load %arg4[%c0_6, %c0_7] : memref<256x256xf32, #tpu.memory_space<vmem>>, vector<256x256xf32>
    %cst_8 = arith.constant dense<0.000000e+00> : vector<16x256xf32>
    %9 = tpu.matmul %7, %8, %cst_8 {dimension_numbers = #tpu.dot_dimension_numbers<[1], [0], [0], [1], [0, 0, 1, 1], [], []>} : vector<16x256xf32>, vector<256x256xf32>, vector<16x256xf32> -> vector<16x256xf32>
    %c0_9 = arith.constant 0 : index
    %c0_10 = arith.constant 0 : index
    %10 = vector.load %arg5[%c0_9, %c0_10] : memref<1x256xf32, #tpu.memory_space<vmem>>, vector<1x256xf32>
    %11 = vector.broadcast %10 : vector<1x256xf32> to vector<16x256xf32>
    %12 = arith.addf %9, %11 : vector<16x256xf32>
    %c0_11 = arith.constant 0 : index
    %c0_12 = arith.constant 0 : index
    %13 = vector.load %arg6[%c0_11, %c0_12] : memref<16x256xf32, #tpu.memory_space<vmem>>, vector<16x256xf32>
    tpu.vector_store %arg6[%c0_11, %c0_12], %12 {strides = array<i32>} : memref<16x256xf32, #tpu.memory_space<vmem>>, vector<16x256xf32>,
    return
  }
  func.func @transform_0(%arg0: i32) -> (i32, i32) {
    %c0_i32 = arith.constant 0 : i32
    %c0_i32_0 = arith.constant 0 : i32
    return %arg0, %c0_i32 : i32, i32
  }
  func.func @transform_1(%arg0: i32) -> (i32, i32) {
    %c0_i32 = arith.constant 0 : i32
    %c0_i32_0 = arith.constant 0 : i32
    %c0_i32_1 = arith.constant 0 : i32
    return %c0_i32, %c0_i32_0 : i32, i32
  }
  func.func @transform_2(%arg0: i32) -> (i32, i32) {
    %c0_i32 = arith.constant 0 : i32
    %c0_i32_0 = arith.constant 0 : i32
    %c0_i32_1 = arith.constant 0 : i32
    return %c0_i32, %c0_i32_0 : i32, i32
  }
  func.func @transform_3(%arg0: i32) -> (i32, i32) {
    %c0_i32 = arith.constant 0 : i32
    %c0_i32_0 = arith.constant 0 : i32
    %c0_i32_1 = arith.constant 0 : i32
    return %c0_i32, %c0_i32_0 : i32, i32
  }
  func.func @transform_4(%arg0: i32) -> (i32, i32) {
    %c0_i32 = arith.constant 0 : i32
    %c0_i32_0 = arith.constant 0 : i32
    %c0_i32_1 = arith.constant 0 : i32
    return %c0_i32, %c0_i32_0 : i32, i32
  }
  func.func @transform_5(%arg0: i32) -> (i32, i32) {
    %c0_i32 = arith.constant 0 : i32
    %c0_i32_0 = arith.constant 0 : i32
    return %arg0, %c0_i32 : i32, i32
  }
}

</mosaic_0001>

<bundles_post_ra>
// kernel: mlp_head_apply.1
= control target key start
LH: loop header
LB: loop body
LE: loop exit
PB: predicated region body
PF: predicated region fallthrough
CT: control target
= control target key end

     0   :  { %10 = vsyncpa [#allocation3], 0  ;;  %s490_s0 = inlined_call_operand.hbm [shape: f32[16,128], index: 0, kind: input, shape index: {}]   ;;  %s491_s1 = inlined_call_operand.hbm [shape: f32[128,256], index: 1, kind: input, shape index: {}]   ;;  %s492_s2 = inlined_call_operand.vmem [shape: f32[1,256], index: 2, kind: input, shape index: {}]   ;;  %s493_s3 = inlined_call_operand.hbm [shape: f32[256,256], index: 3, kind: input, shape index: {}]   ;;  %s494_s4 = inlined_call_operand.vmem [shape: f32[1,256], index: 4, kind: input, shape index: {}]   ;;  %s495_s5 = inlined_call_operand.vmem [shape: f32[16,256], index: 5, kind: output, shape index: {}]  }
   0x1   :  { %11 = vsyncpa [#allocation5], 0  ;;  %s423_s18 = smov [#allocation4]  }
   0x2   :  { %s29_s19 = sshll.u32 %s423_s18, 4  ;;  %s30_s19 = int_to_ptr.vmem [resolvable:$true] %s29_s19 }
   0x3   :  { %s367_s20 = scalar_lea.vmem %s30_s19, 4096  ;;  %p372_p1 = scmp.lt.s32.totalorder %s30_s19, %s30_s19 }
   0x4   :  { %p368_p0 = scmp.ne.s32.totalorder %s30_s19, %s367_s20  ;;  %p373_p2 = scmp.lt.s32.totalorder %s367_s20, %s367_s20 }
   0x6   :  { %p374_p3 = por %p373_p2, %p372_p1 }
   0x8   :  { %p375_p4 = pnand %p374_p3, %p368_p0 }
   0xa   :  { %378 = shalt.err (!%p375_p4)
}
   0xb   :  { %s424_s21 = smov 256   ;;  %s425_s22 = smov 16  }
   0xc   :  { %35 = dma.hbm_to_vmem [thread:$0]  %s491_s1, 4096, %s30_s19, [#allocation5], %s424_s21, %s424_s21, %s425_s22  }
   0xd   :  { %s426_s25 = smov [#allocation2]  }
   0xe   :  { %s17_s26 = sshll.u32 %s426_s25, 4  ;;  %s18_s26 = int_to_ptr.vmem [resolvable:$true] %s17_s26 }
   0xf   :  { %s387_s27 = scalar_lea.vmem %s18_s26, 256  ;;  %p392_p6 = scmp.lt.s32.totalorder %s18_s26, %s18_s26 }
  0x10   :  { %p388_p5 = scmp.ne.s32.totalorder %s18_s26, %s387_s27  ;;  %p393_p7 = scmp.lt.s32.totalorder %s387_s27, %s387_s27 }
  0x12   :  { %p394_p8 = por %p393_p7, %p392_p6 }
  0x14   :  { %p395_p9 = pnand %p394_p8, %p388_p5 }
  0x16   :  { %398 = shalt.err (!%p395_p9)
}
  0x17   :  { %s427_s28 = smov 128   ;;  %s428_s29 = smov 8  }
  0x18   :  { %23 = dma.hbm_to_vmem [thread:$0]  %s490_s0, 256, %s18_s26, [#allocation3], %s427_s28, %s427_s28, %s428_s29  }
  0x19   :  { %s429_s7 = smov [#allocation6]  }
  0x1a   :  { %s43_s8 = sshll.u32 %s429_s7, 4  ;;  %s44_s8 = int_to_ptr.vmem [resolvable:$true] %s43_s8 }
  0x1b   :  { %s407_s1 = scalar_lea.vmem %s44_s8, 8192  ;;  %p412_p11 = scmp.lt.s32.totalorder %s44_s8, %s44_s8 }
  0x1c   :  { %p408_p10 = scmp.ne.s32.totalorder %s44_s8, %s407_s1  ;;  %p413_p12 = scmp.lt.s32.totalorder %s407_s1, %s407_s1 }
  0x1e   :  { %p414_p13 = por %p413_p12, %p412_p11 }
  0x20   :  { %p415_p0 = pnand %p414_p13, %p408_p10 }
  0x22   :  { %418 = shalt.err (!%p415_p0)
}
  0x23   :  { %49 = dma.hbm_to_vmem [thread:$0]  %s493_s3, 8192, %s44_s8, [#allocation5], %s424_s21, %s424_s21, %s425_s22  }
  0x24   :  { %419 = dma.done.wait [#allocation3], 256  }
  0x25   :  { %420 = vsyncadd [#allocation3], 4294967040 }
  0x26   :  { %421 = dma.done.wait [#allocation5], 12288  }
  0x27   :  { %422 = vsyncadd [#allocation5], 4294955008  ;;  %v430_v0 = vmov 0.0   ;;  %v94_v1 = vld [vmem:[#allocation4 + $0xf8] sm:$0xff]  ;;  %v93_v2 = vld [vmem:[#allocation4 + $0xf0] sm:$0xff] }
  0x28   :  { %171 = vmatprep.mubr.f32.mxu0 %v430_v0  ;;  %v92_v3 = vld [vmem:[#allocation4 + $0xe8] sm:$0xff]  ;;  %107 = vmatprep.subr.mxu0 %v94_v1  ;;  %v91_v4 = vld [vmem:[#allocation4 + $0xe0] sm:$0xff]  ;;  %v90_v5 = vld [vmem:[#allocation4 + $0xd8] sm:$0xff] }
  0x29   :  { %108 = vmatpush1.msra.mxu0 %v93_v2  ;;  %v89_v6 = vld [vmem:[#allocation4 + $0xd0] sm:$0xff]  ;;  %v88_v7 = vld [vmem:[#allocation4 + $0xc8] sm:$0xff]  ;;  %v87_v8 = vld [vmem:[#allocation4 + $0xc0] sm:$0xff] }
  0x2a   :  { %109 = vmatprep.subr.mxu0 %v92_v3  ;;  %v86_v9 = vld [vmem:[#allocation4 + $0xb8] sm:$0xff]  ;;  %v85_v10 = vld [vmem:[#allocation4 + $0xb0] sm:$0xff]  ;;  %v84_v11 = vld [vmem:[#allocation4 + $0xa8] sm:$0xff] }
  0x2b   :  { %110 = vmatpush1.msra.mxu0 %v91_v4  ;;  %v83_v12 = vld [vmem:[#allocation4 + $0xa0] sm:$0xff]  ;;  %v82_v13 = vld [vmem:[#allocation4 + $0x98] sm:$0xff]  ;;  %v81_v14 = vld [vmem:[#allocation4 + $0x90] sm:$0xff] }
  0x2c   :  { %111 = vmatprep.subr.mxu0 %v90_v5  ;;  %v219_v15 = vld [vmem:[#allocation6 + $0xf8] sm:$0xff]  ;;  %v218_v16 = vld [vmem:[#allocation6 + $0xf0] sm:$0xff]  ;;  %v80_v17 = vld [vmem:[#allocation4 + $0x88] sm:$0xff] }
  0x2d   :  { %112 = vmatpush1.msra.mxu0 %v89_v6  ;;  %264 = vmatprep.subr.mxu1 %v219_v15  ;;  %v217_v18 = vld [vmem:[#allocation6 + $0xe8] sm:$0xff]  ;;  %v216_v19 = vld [vmem:[#allocation6 + $0xe0] sm:$0xff]  ;;  %v215_v21 = vld [vmem:[#allocation6 + $0xd8] sm:$0xff] }
  0x2e   :  { %113 = vmatprep.subr.mxu0 %v88_v7  ;;  %v79_v20 = vld [vmem:[#allocation4 + $0x80] sm:$0xff]  ;;  %265 = vmatpush1.msra.mxu1 %v218_v16  ;;  %v78_v22 = vld [vmem:[#allocation4 + $0x78] sm:$0xff]  ;;  %v214_v23 = vld [vmem:[#allocation6 + $0xd0] sm:$0xff] }
  0x2f   :  { %114 = vmatpush1.msra.mxu0 %v87_v8  ;;  %266 = vmatprep.subr.mxu1 %v217_v18  ;;  %v77_v24 = vld [vmem:[#allocation4 + $0x70] sm:$0xff]  ;;  %v213_v25 = vld [vmem:[#allocation6 + $0xc8] sm:$0xff]  ;;  %v212_v27 = vld [vmem:[#allocation6 + $0xc0] sm:$0xff] }
  0x30   :  { %115 = vmatprep.subr.mxu0 %v86_v9  ;;  %267 = vmatpush1.msra.mxu1 %v216_v19  ;;  %v76_v26 = vld [vmem:[#allocation4 + $0x68] sm:$0xff]  ;;  %v75_v28 = vld [vmem:[#allocation4 + $0x60] sm:$0xff]  ;;  %v211_v29 = vld [vmem:[#allocation6 + $0xb8] sm:$0xff] }
  0x31   :  { %116 = vmatpush1.msra.mxu0 %v85_v10  ;;  %268 = vmatprep.subr.mxu1 %v215_v21  ;;  %v74_v30 = vld [vmem:[#allocation4 + $0x58] sm:$0xff]  ;;  %v210_v31 = vld [vmem:[#allocation6 + $0xb0] sm:$0xff]  ;;  %v209_v33 = vld [vmem:[#allocation6 + $0xa8] sm:$0xff] }
  0x32   :  { %117 = vmatprep.subr.mxu0 %v84_v11  ;;  %269 = vmatpush1.msra.mxu1 %v214_v23  ;;  %v73_v32 = vld [vmem:[#allocation4 + $0x50] sm:$0xff]  ;;  %v72_v34 = vld [vmem:[#allocation4 + $0x48] sm:$0xff]  ;;  %v208_v35 = vld [vmem:[#allocation6 + $0xa0] sm:$0xff] }
  0x33   :  { %118 = vmatpush1.msra.mxu0 %v83_v12  ;;  %270 = vmatprep.subr.mxu1 %v213_v25  ;;  %v71_v36 = vld [vmem:[#allocation4 + $0x40] sm:$0xff]  ;;  %v207_v37 = vld [vmem:[#allocation6 + $0x98] sm:$0xff]  ;;  %v206_v39 = vld [vmem:[#allocation6 + $0x90] sm:$0xff] }
  0x34   :  { %119 = vmatprep.subr.mxu0 %v82_v13  ;;  %271 = vmatpush1.msra.mxu1 %v212_v27  ;;  %v70_v38 = vld [vmem:[#allocation4 + $0x38] sm:$0xff]  ;;  %v69_v40 = vld [vmem:[#allocation4 + $0x30] sm:$0xff]  ;;  %v205_v41 = vld [vmem:[#allocation6 + $0x88] sm:$0xff] }
  0x35   :  { %120 = vmatpush1.msra.mxu0 %v81_v14  ;;  %272 = vmatprep.subr.mxu1 %v211_v29  ;;  %v68_v42 = vld [vmem:[#allocation4 + $0x28] sm:$0xff]  ;;  %v204_v43 = vld [vmem:[#allocation6 + $0x80] sm:$0xff]  ;;  %v203_v45 = vld [vmem:[#allocation6 + $0x78] sm:$0xff] }
  0x36   :  { %121 = vmatprep.subr.mxu0 %v80_v17  ;;  %273 = vmatpush1.msra.mxu1 %v210_v31  ;;  %v67_v44 = vld [vmem:[#allocation4 + $0x20] sm:$0xff]  ;;  %v66_v46 = vld [vmem:[#allocation4 + $0x18] sm:$0xff]  ;;  %v202_v47 = vld [vmem:[#allocation6 + $0x70] sm:$0xff] }
  0x37   :  { %122 = vmatpush1.msra.mxu0 %v79_v20  ;;  %274 = vmatprep.subr.mxu1 %v209_v33  ;;  %v65_v48 = vld [vmem:[#allocation4 + $0x10] sm:$0xff]  ;;  %v201_v49 = vld [vmem:[#allocation6 + $0x68] sm:$0xff]  ;;  %v200_v51 = vld [vmem:[#allocation6 + $0x60] sm:$0xff] }
  0x38   :  { %123 = vmatprep.subr.mxu0 %v78_v22  ;;  %275 = vmatpush1.msra.mxu1 %v208_v35  ;;  %v64_v50 = vld [vmem:[#allocation4 + $0x8] sm:$0xff]  ;;  %v63_v52 = vld [vmem:[#allocation4] sm:$0xff]  ;;  %v199_v53 = vld [vmem:[#allocation6 + $0x58] sm:$0xff]  ;;  %v97_v35 = vlaneseq }
  0x39   :  { %124 = vmatpush1.msra.mxu0 %v77_v24  ;;  %276 = vmatprep.subr.mxu1 %v207_v37  ;;  %v61_v54 = vld [vmem:[#allocation2] sm:$0xff]  ;;  %v197_v56 = vld [vmem:[#allocation6 + $0x48] sm:$0xff]  ;;  %v196_v57 = vld [vmem:[#allocation6 + $0x40] sm:$0xff] }
  0x3a   :  { %125 = vmatprep.subr.mxu0 %v76_v26  ;;  %277 = vmatpush1.msra.mxu1 %v206_v39  ;;  %v198_v55 = vld [vmem:[#allocation6 + $0x50] sm:$0xff]  ;;  %v195_v58 = vld [vmem:[#allocation6 + $0x38] sm:$0xff]  ;;  %v193_v61 = vld [vmem:[#allocation6 + $0x28] sm:$0xff] }
  0x3b   :  { %126 = vmatpush1.msra.mxu0 %v75_v28  ;;  %278 = vmatprep.subr.mxu1 %v205_v41  ;;  %v62_v59 = vld [vmem:[#allocation2 + $0x8] sm:$0xff]  ;;  %v194_v60 = vld [vmem:[#allocation6 + $0x30] sm:$0xff]  ;;  %v192_v62 = vld [vmem:[#allocation6 + $0x20] sm:$0xff] }
  0x3c   :  { %127 = vmatprep.subr.mxu0 %v74_v30  ;;  %279 = vmatpush1.msra.mxu1 %v204_v43  ;;  %v191_v63 = vld [vmem:[#allocation6 + $0x18] sm:$0xff]  ;;  %v190_v1 = vld [vmem:[#allocation6 + $0x10] sm:$0xff]  ;;  %v189_v2 = vld [vmem:[#allocation6 + $0x8] sm:$0xff] }
  0x3d   :  { %128 = vmatpush1.msra.mxu0 %v73_v32  ;;  %280 = vmatprep.subr.mxu1 %v203_v45  ;;  %v188_v3 = vld [vmem:[#allocation6] sm:$0xff]  ;;  %v251_v4 = vld [vmem:[#allocation6 + $0x1f8] sm:$0xff]  ;;  %v249_v5 = vld [vmem:[#allocation6 + $0x1e8] sm:$0xff] }
  0x3e   :  { %129 = vmatprep.subr.mxu0 %v72_v34  ;;  %281 = vmatpush1.msra.mxu1 %v202_v47  ;;  %v248_v6 = vld [vmem:[#allocation6 + $0x1e0] sm:$0xff]  ;;  %v247_v7 = vld [vmem:[#allocation6 + $0x1d8] sm:$0xff]  ;;  %v246_v8 = vld [vmem:[#allocation6 + $0x1d0] sm:$0xff] }
  0x3f   :  { %130 = vmatpush1.msra.mxu0 %v71_v36  ;;  %282 = vmatprep.subr.mxu1 %v201_v49  ;;  %v245_v9 = vld [vmem:[#allocation6 + $0x1c8] sm:$0xff]  ;;  %v244_v10 = vld [vmem:[#allocation6 + $0x1c0] sm:$0xff]  ;;  %v243_v11 = vld [vmem:[#allocation6 + $0x1b8] sm:$0xff]  ;;  %v98_v36 = vshrl.u32 %v97_v35, 7 }
  0x40   :  { %131 = vmatprep.subr.mxu0 %v70_v38  ;;  %283 = vmatpush1.msra.mxu1 %v200_v51  ;;  %v242_v12 = vld [vmem:[#allocation6 + $0x1b0] sm:$0xff]  ;;  %v241_v13 = vld [vmem:[#allocation6 + $0x1a8] sm:$0xff]  ;;  %v240_v14 = vld [vmem:[#allocation6 + $0x1a0] sm:$0xff] }
  0x41   :  { %132 = vmatpush1.msra.mxu0 %v69_v40  ;;  %284 = vmatprep.subr.mxu1 %v199_v53  ;;  %v239_v15 = vld [vmem:[#allocation6 + $0x198] sm:$0xff]  ;;  %v238_v16 = vld [vmem:[#allocation6 + $0x190] sm:$0xff]  ;;  %v237_v17 = vld [vmem:[#allocation6 + $0x188] sm:$0xff]  ;;  %v99_v37 = vsub.s32 0, %v98_v36  ;;  %v103_v39 = vsub.s32 1, %v98_v36 }
  0x42   :  { %133 = vmatprep.subr.mxu0 %v68_v42  ;;  %285 = vmatpush1.msra.mxu1 %v198_v55  ;;  %v236_v18 = vld [vmem:[#allocation6 + $0x180] sm:$0xff]  ;;  %v235_v19 = vld [vmem:[#allocation6 + $0x178] sm:$0xff]  ;;  %v234_v20 = vld [vmem:[#allocation6 + $0x170] sm:$0xff] }
  0x43   :  { %134 = vmatpush1.msra.mxu0 %v67_v44  ;;  %286 = vmatprep.subr.mxu1 %v197_v56  ;;  %v233_v21 = vld [vmem:[#allocation6 + $0x168] sm:$0xff]  ;;  %v232_v22 = vld [vmem:[#allocation6 + $0x160] sm:$0xff]  ;;  %v231_v23 = vld [vmem:[#allocation6 + $0x158] sm:$0xff] }
  0x44   :  { %135 = vmatprep.subr.mxu0 %v66_v46  ;;  %287 = vmatpush1.msra.mxu1 %v196_v57  ;;  %v230_v24 = vld [vmem:[#allocation6 + $0x150] sm:$0xff]  ;;  %v229_v25 = vld [vmem:[#allocation6 + $0x148] sm:$0xff]  ;;  %v228_v26 = vld [vmem:[#allocation6 + $0x140] sm:$0xff] }
  0x45   :  { %136 = vmatpush1.msra.mxu0 %v65_v48  ;;  %288 = vmatprep.subr.mxu1 %v195_v58  ;;  %v227_v27 = vld [vmem:[#allocation6 + $0x138] sm:$0xff]  ;;  %v226_v28 = vld [vmem:[#allocation6 + $0x130] sm:$0xff]  ;;  %v225_v29 = vld [vmem:[#allocation6 + $0x128] sm:$0xff] }
  0x46   :  { %137 = vmatprep.subr.mxu0 %v64_v50  ;;  %289 = vmatpush1.msra.mxu1 %v194_v60  ;;  %v224_v30 = vld [vmem:[#allocation6 + $0x120] sm:$0xff]  ;;  %v223_v31 = vld [vmem:[#allocation6 + $0x118] sm:$0xff]  ;;  %v222_v32 = vld [vmem:[#allocation6 + $0x110] sm:$0xff] }
  0x47   :  { %138 = vmatpush1.msra.mxu0 %v63_v52  ;;  %290 = vmatprep.subr.mxu1 %v193_v61  ;;  %v221_v33 = vld [vmem:[#allocation6 + $0x108] sm:$0xff]  ;;  %v220_v34 = vld [vmem:[#allocation6 + $0x100] sm:$0xff]  ;;  %v95_v38 = vld [vmem:[%s492_s2] sm:$0x3] }
  0x48   :  { %172 = vmatmul.mubr.f32.vlgmr.msra.gmra.mxu0 %v61_v54  ;;  %291 = vmatpush1.msra.mxu1 %v192_v62  ;;  %v100_v40 = vrot.slane %v95_v38, %v99_v37  ;;  %v104_v41 = vrot.slane %v95_v38, %v103_v39  ;;  %v252_v54 = vld [vmem:[%s494_s4] sm:$0x3] }
  0x49   :  { %177 = vmatprep.mubr.f32.mxu0 %v430_v0  ;;  %292 = vmatprep.subr.mxu1 %v191_v63  ;;  %v250_v0 = vld [vmem:[#allocation6 + $0x1f0] sm:$0xff]  ;;  %v257_v55 = vrot.slane %v252_v54, %v99_v37  ;;  %v261_v56 = vrot.slane %v252_v54, %v103_v39 }
  0x4a   :  { %293 = vmatpush1.msra.mxu1 %v190_v1 }
  0x4b   :  { %294 = vmatprep.subr.mxu1 %v189_v2 }
  0x4c   :  { %178 = vmatmul.mubr.f32.gmra.mxu0 %v62_v59  ;;  %295 = vmatpush1.msra.mxu1 %v188_v3 }
  0x4d   :  { %296 = vmatprep.subr.mxu1 %v251_v4 }
  0x4e   :  { %297 = vmatpush2.msra.mxu1 %v250_v0 }
  0x4f   :  { %298 = vmatprep.subr.mxu1 %v249_v5 }
  0x50   :  { %299 = vmatpush2.msra.mxu1 %v248_v6 }
  0x51   :  { %300 = vmatprep.subr.mxu1 %v247_v7 }
  0x52   :  { %301 = vmatpush2.msra.mxu1 %v246_v8 }
  0x53   :  { %302 = vmatprep.subr.mxu1 %v245_v9 }
  0x54   :  { %303 = vmatpush2.msra.mxu1 %v244_v10 }
  0x55   :  { %304 = vmatprep.subr.mxu1 %v243_v11 }
  0x56   :  { %305 = vmatpush2.msra.mxu1 %v242_v12 }
  0x57   :  { %306 = vmatprep.subr.mxu1 %v241_v13 }
  0x58   :  { %307 = vmatpush2.msra.mxu1 %v240_v14 }
  0x59   :  { %308 = vmatprep.subr.mxu1 %v239_v15 }
  0x5a   :  { %309 = vmatpush2.msra.mxu1 %v238_v16 }
  0x5b   :  { %310 = vmatprep.subr.mxu1 %v237_v17 }
  0x5c   :  { %311 = vmatpush2.msra.mxu1 %v236_v18 }
  0x5d   :  { %312 = vmatprep.subr.mxu1 %v235_v19 }
  0x5e   :  { %313 = vmatpush2.msra.mxu1 %v234_v20 }
  0x5f   :  { %314 = vmatprep.subr.mxu1 %v233_v21 }
  0x60   :  { %315 = vmatpush2.msra.mxu1 %v232_v22 }
  0x61   :  { %316 = vmatprep.subr.mxu1 %v231_v23 }
  0x62   :  { %317 = vmatpush2.msra.mxu1 %v230_v24 }
  0x63   :  { %318 = vmatprep.subr.mxu1 %v229_v25 }
  0x64   :  { %319 = vmatpush2.msra.mxu1 %v228_v26 }
  0x65   :  { %320 = vmatprep.subr.mxu1 %v227_v27 }
  0x66   :  { %321 = vmatpush2.msra.mxu1 %v226_v28 }
  0x67   :  { %322 = vmatprep.subr.mxu1 %v225_v29 }
  0x68   :  { %323 = vmatpush2.msra.mxu1 %v224_v30 }
  0x69   :  { %324 = vmatprep.subr.mxu1 %v223_v31 }
  0x6a   :  { %325 = vmatpush2.msra.mxu1 %v222_v32 }
  0x6b   :  { %326 = vmatprep.subr.mxu1 %v221_v33 }
  0x6c   :  { %327 = vmatpush2.msra.mxu1 %v220_v34 }
 0x108   :  { %v173_v42 = vpop.f32.mrf.mxu0 }
 0x109   :  { %v174_v43 = vadd.f32 %v173_v42, %v100_v40 }
 0x10a   :  { %v175_v44 = vpop.f32.mrf.mxu0 }
 0x10b   :  { %v176_v45 = vadd.f32 %v175_v44, %v104_v41  ;;  %v184_v48 = vmax.f32 %v174_v43, 0.0 }
 0x10c   :  { %v179_v46 = vpop.f32.mrf.mxu0 }
 0x10d   :  { %v185_v47 = vmax.f32 %v176_v45, 0.0  ;;  %v180_v49 = vadd.f32 %v179_v46, %v100_v40 }
 0x10e   :  { %v181_v50 = vpop.f32.mrf.mxu0 }
 0x10f   :  { %v182_v51 = vadd.f32 %v181_v50, %v104_v41  ;;  %328 = vmatprep.mubr.f32.mxu1 %v185_v47  ;;  %v186_v53 = vmax.f32 %v180_v49, 0.0 }
 0x110   :  { %329 = vmatmul.mubr.f32.vlgmr.msra.gmra.mxu1 %v184_v48 }
 0x111   :  { %v187_v52 = vmax.f32 %v182_v51, 0.0 }
 0x113   :  { %334 = vmatprep.mubr.f32.mxu1 %v187_v52 }
 0x114   :  { %335 = vmatmul.mubr.f32.gmra.mxu1 %v186_v53 }
 0x1d0   :  { %v330_v57 = vpop.f32.mrf.mxu1 }
 0x1d1   :  { %v331_v58 = vadd.f32 %v330_v57, %v257_v55 }
 0x1d2   :  { %v332_v59 = vpop.f32.mrf.mxu1 }
 0x1d3   :  { %341 = vst [vmem:[%s495_s5] sm:$0xff] %v331_v58  ;;  %v333_v60 = vadd.f32 %v332_v59, %v261_v56 }
 0x1d4   :  { %v336_v61 = vpop.f32.mrf.mxu1 }
 0x1d5   :  { %342 = vst [vmem:[%s495_s5 + $0x8] sm:$0xff] %v333_v60  ;;  %v337_v62 = vadd.f32 %v336_v61, %v257_v55 }
 0x1d6   :  { %v338_v63 = vpop.f32.mrf.mxu1 }
 0x1d7   :  { %343 = vst [vmem:[%s495_s5 + $0x10] sm:$0xff] %v337_v62  ;;  %v339_v1 = vadd.f32 %v338_v63, %v261_v56 }
 0x1d9   :  { %344 = vst [vmem:[%s495_s5 + $0x18] sm:$0xff] %v339_v1 }
 0x1da   :  { %349 = vsyncpa [#allocation3], 1 }
 0x1db   :  { %350 = vsyncpa [#allocation5], 1 }

</bundles_post_ra>
